<compile_context>
chip_gen: v6e
topology: v6e:2x2x1
jax: 0.10.0
libtpu: 0.0.40
codegen_flags: <defaults>
</compile_context>

<pallas_src>
import functools

import jax
import jax.numpy as jnp
from jax.experimental import pallas as pl
from jax.experimental.pallas import tpu as pltpu


_VMEM_LIMIT_BYTES = 48 * 1024 * 1024  # raised scoped-VMEM limit; OK on v5e/v6e/v7x


def layernorm_kernel(x_ref, gamma_ref, beta_ref, o_ref, *, eps, features):
    x = x_ref[...].astype(jnp.float32)          # (tile_rows, F), compute in f32
    gamma = gamma_ref[...]                      # (1, F), already f32
    beta = beta_ref[...]                        # (1, F), already f32

    mean = jnp.mean(x, axis=-1, keepdims=True)  # (tile_rows, 1)
    centered = x - mean
    # torch.Tensor.std default is unbiased (ddof=1): divide by (F - 1).
    # NOTE: F == 1 gives nan, same as the PyTorch reference.
    var = jnp.sum(centered * centered, axis=-1, keepdims=True) / (features - 1)
    std = jnp.sqrt(var)
    # eps is added to std (not var) to match the reference module.
    # Exact divide (not approx EUP reciprocal) -- the kernel is memory-bound,
    # so this is hidden behind the HBM DMA and keeps full f32 accuracy.
    inv = 1.0 / (std + eps)

    o_ref[...] = (gamma * (centered * inv) + beta).astype(o_ref.dtype)


def _choose_tile_rows(R, F, dtype):
    """Pick the largest row tile that fits the VMEM budget (kernel is HBM-bound)."""
    itemsize = jnp.dtype(dtype).itemsize
    sublane = max(8, 32 // itemsize)            # 8 for f32, 16 for bf16, 32 for int8
    # Per-row VMEM cost estimate: double-buffered input + output (4 buffers in the
    # I/O dtype) plus ~2 f32-tile-sized intermediates inside the kernel body.
    per_row_bytes = F * (4 * itemsize + 2 * 4)
    budget = _VMEM_LIMIT_BYTES // 2             # leave headroom for spills/scratch
    t = max(sublane, budget // max(per_row_bytes, 1))
    # Keep the row grid reasonably long so both v7x TensorCores get work.
    t = min(t, max(sublane, pl.cdiv(R, 8)))
    t = min(t, 1024)                            # diminishing returns beyond this
    if t >= R:
        return R                                # single full-extent block (always legal)
    return max(sublane, (t // sublane) * sublane)


def layer_norm(x, gamma, beta, eps=1e-6, tile_rows=None):
    """x: (..., F); gamma, beta: (F,). Matches a_2*(x-mean)/(std+eps)+b_2."""
    orig_shape = x.shape
    F = orig_shape[-1]
    x2 = x.reshape(-1, F)
    R = x2.shape[0]

    if tile_rows is None:
        tile_rows = _choose_tile_rows(R, F, x2.dtype)

    # Cast params to f32 once, outside the kernel; constant index_map keeps
    # them resident across grid steps (no re-DMA, no per-step cast).
    gamma2 = gamma.reshape(1, F).astype(jnp.float32)
    beta2 = beta.reshape(1, F).astype(jnp.float32)

    grid = (pl.cdiv(R, tile_rows),)             # no padding; ragged tail is masked

    kernel = functools.partial(layernorm_kernel, eps=eps, features=F)

    out = pl.pallas_call(
        kernel,
        out_shape=jax.ShapeDtypeStruct((R, F), x.dtype),
        grid_spec=pltpu.PrefetchScalarGridSpec(
            num_scalar_prefetch=0,
            grid=grid,
            in_specs=[
                pl.BlockSpec((tile_rows, F), lambda i: (i, 0)),
                pl.BlockSpec((1, F), lambda i: (0, 0)),
                pl.BlockSpec((1, F), lambda i: (0, 0)),
            ],
            out_specs=pl.BlockSpec((tile_rows, F), lambda i: (i, 0)),
        ),
        compiler_params=pltpu.CompilerParams(
            dimension_semantics=("parallel",),
            vmem_limit_bytes=_VMEM_LIMIT_BYTES,
        ),
    )(x2, gamma2, beta2)

    return out.reshape(orig_shape)


if __name__ == "__main__":
    key = jax.random.PRNGKey(0)
    batch, seq, hidden = 2, 8, 32
    # NOTE: hidden=32 (< 128 lanes) is just the toy spec shape; for real models
    # keep F a multiple of 128 so stores stay lane-dense.

    x = jax.random.normal(key, (batch, seq, hidden), dtype=jnp.float32)

    # Deterministic parameter init, matching nn.Parameter(torch.ones/zeros(features))
    gamma = jnp.ones((hidden,), dtype=jnp.float32)   # a_2
    beta = jnp.zeros((hidden,), dtype=jnp.float32)   # b_2
    eps = 1e-6

    out = layer_norm(x, gamma, beta, eps=eps)
    out = jax.block_until_ready(out)

    # Reference in plain JAX (unbiased std, same as torch.std default).
    mean = jnp.mean(x, axis=-1, keepdims=True)
    std = jnp.sqrt(jnp.sum((x - mean) ** 2, axis=-1, keepdims=True) / (hidden - 1))
    ref = gamma * (x - mean) / (std + eps) + beta

    assert out.shape == x.shape
    assert jnp.max(jnp.abs(out - ref)) < 1e-4, "mismatch vs reference"

    print("KERNEL_OK")
</pallas_src>

<mosaic_0001>
module attributes {stable_mosaic.version = 11 : i64} {
  func.func @layernorm_kernel(%arg0: i32, %arg1: memref<8x32xf32, #tpu.memory_space<vmem>>, %arg2: memref<1x32xf32, #tpu.memory_space<vmem>>, %arg3: memref<1x32xf32, #tpu.memory_space<vmem>>, %arg4: memref<8x32xf32, #tpu.memory_space<vmem>>) attributes {dimension_semantics = [#tpu.dimension_semantics<parallel>], iteration_bounds = array<i64: 2>, scalar_prefetch = 0 : i64, scratch_operands = 0 : i64, tpu.core_type = #tpu.core_type<tc>, window_params = [{transform_indices = @transform_0, window_bounds = array<i64: 8, 32>}, {pipeline_mode = #tpu.pipeline_mode<synchronous>, transform_indices = @transform_1, window_bounds = array<i64: 1, 32>}, {pipeline_mode = #tpu.pipeline_mode<synchronous>, transform_indices = @transform_2, window_bounds = array<i64: 1, 32>}, {transform_indices = @transform_3, window_bounds = array<i64: 8, 32>}]} {
    %c0 = arith.constant 0 : index
    %c0_0 = arith.constant 0 : index
    %0 = vector.load %arg1[%c0, %c0_0] : memref<8x32xf32, #tpu.memory_space<vmem>>, vector<8x32xf32>
    %c0_1 = arith.constant 0 : index
    %c0_2 = arith.constant 0 : index
    %1 = vector.load %arg2[%c0_1, %c0_2] : memref<1x32xf32, #tpu.memory_space<vmem>>, vector<1x32xf32>
    %c0_3 = arith.constant 0 : index
    %c0_4 = arith.constant 0 : index
    %2 = vector.load %arg3[%c0_3, %c0_4] : memref<1x32xf32, #tpu.memory_space<vmem>>, vector<1x32xf32>
    %cst = arith.constant dense<0.000000e+00> : vector<8xf32>
    %3 = vector.multi_reduction <add>, %0, %cst [1] : vector<8x32xf32> to vector<8xf32>
    %4 = vector.shape_cast %3 : vector<8xf32> to vector<8x1xf32>
    %cst_5 = arith.constant 3.200000e+01 : f32
    %5 = vector.broadcast %cst_5 : f32 to vector<8x1xf32>
    %6 = arith.divf %4, %5 : vector<8x1xf32>
    %7 = vector.broadcast %6 : vector<8x1xf32> to vector<8x32xf32>
    %8 = arith.subf %0, %7 : vector<8x32xf32>
    %9 = arith.mulf %8, %8 : vector<8x32xf32>
    %cst_6 = arith.constant dense<0.000000e+00> : vector<8xf32>
    %10 = vector.multi_reduction <add>, %9, %cst_6 [1] : vector<8x32xf32> to vector<8xf32>
    %11 = vector.shape_cast %10 : vector<8xf32> to vector<8x1xf32>
    %cst_7 = arith.constant 3.100000e+01 : f32
    %12 = vector.broadcast %cst_7 : f32 to vector<8x1xf32>
    %13 = arith.divf %11, %12 : vector<8x1xf32>
    %14 = math.sqrt %13 : vector<8x1xf32>
    %cst_8 = arith.constant 9.99999997E-7 : f32
    %15 = vector.broadcast %cst_8 : f32 to vector<8x1xf32>
    %16 = arith.addf %14, %15 : vector<8x1xf32>
    %cst_9 = arith.constant 1.000000e+00 : f32
    %17 = vector.broadcast %cst_9 : f32 to vector<8x1xf32>
    %18 = arith.divf %17, %16 : vector<8x1xf32>
    %19 = vector.broadcast %18 : vector<8x1xf32> to vector<8x32xf32>
    %20 = arith.mulf %8, %19 : vector<8x32xf32>
    %21 = vector.broadcast %1 : vector<1x32xf32> to vector<8x32xf32>
    %22 = arith.mulf %21, %20 : vector<8x32xf32>
    %23 = vector.broadcast %2 : vector<1x32xf32> to vector<8x32xf32>
    %24 = arith.addf %22, %23 : vector<8x32xf32>
    %c0_10 = arith.constant 0 : index
    %c0_11 = arith.constant 0 : index
    %25 = vector.load %arg4[%c0_10, %c0_11] : memref<8x32xf32, #tpu.memory_space<vmem>>, vector<8x32xf32>
    tpu.vector_store %arg4[%c0_10, %c0_11], %24 {strides = array<i32>} : memref<8x32xf32, #tpu.memory_space<vmem>>, vector<8x32xf32>,
    return
  }
  func.func @transform_0(%arg0: i32) -> (i32, i32) {
    %c0_i32 = arith.constant 0 : i32
    %c0_i32_0 = arith.constant 0 : i32
    return %arg0, %c0_i32 : i32, i32
  }
  func.func @transform_1(%arg0: i32) -> (i32, i32) {
    %c0_i32 = arith.constant 0 : i32
    %c0_i32_0 = arith.constant 0 : i32
    %c0_i32_1 = arith.constant 0 : i32
    return %c0_i32, %c0_i32_0 : i32, i32
  }
  func.func @transform_2(%arg0: i32) -> (i32, i32) {
    %c0_i32 = arith.constant 0 : i32
    %c0_i32_0 = arith.constant 0 : i32
    %c0_i32_1 = arith.constant 0 : i32
    return %c0_i32, %c0_i32_0 : i32, i32
  }
  func.func @transform_3(%arg0: i32) -> (i32, i32) {
    %c0_i32 = arith.constant 0 : i32
    %c0_i32_0 = arith.constant 0 : i32
    return %arg0, %c0_i32 : i32, i32
  }
}

</mosaic_0001>

<bundles_post_ra>
// kernel: tpu_custom_call.1
= control target key start
LH: loop header
LB: loop body
LE: loop exit
PB: predicated region body
PF: predicated region fallthrough
CT: control target
= control target key end

     0   :  { %8 = vsyncpa [#allocation3], 0  ;;  %s646_s0 = inlined_call_operand.hbm [shape: f32[16,32], index: 0, kind: input, shape index: {}]   ;;  %s647_s1 = inlined_call_operand.vmem [shape: f32[1,32], index: 1, kind: input, shape index: {}]   ;;  %s648_s2 = inlined_call_operand.vmem [shape: f32[1,32], index: 2, kind: input, shape index: {}]   ;;  %s649_s3 = inlined_call_operand.hbm [shape: f32[16,32], index: 3, kind: output, shape index: {}]  }
   0x1   :  { %10 = vsyncpa [#allocation3 + $0x1], 0 }
   0x2   :  { %11 = vsyncpa [#allocation4], 0 }
   0x3   :  { %13 = vsyncpa [#allocation4 + $0x1], 0  ;;  %s492_s12 = smov 0   ;;  %s494_s13 = smov 0  }
   0x4   :  { %s496_s14 = smov 0   ;;  %s498_s15 = smov 0  }
   0x5 LB: > { %s513_s16 = sadd.s32 4294967295, %s468_s15   ;;  %s312_s17 = sadd.s32 4294967294, %s468_s15   ;;  %s468_s15 = sphi %s498_s15, %s666_s15   ;;  %s464_s14 = sphi %s496_s14, %s665_s14   ;;  %s460_s13 = sphi %s494_s13, %s664_s13   ;;  %s456_s12 = sphi %s492_s12, %s663_s12  }
   0x6   : > { %s517_s18 = sadd.s32 1, %s468_s15   ;;  %s26_s19 = sadd.s32 1, %s464_s14 }
   0x7   : > { %s23_s20 = ssub.s32 %s468_s15, %s517_s18  ;;  %p33_p0 = scmp.ne.s32.totalorder %s464_s14, %s460_s13 }
   0x8   : > { %p24_p1 = scmp.eq.s32.totalorder %s23_s20, 0  ;;  %p34_p2 = scmp.eq.s32.totalorder %s468_s15, 0 }
   0x9   : > { %p39_p3 = scmp.ne.s32.totalorder %s460_s13, %s456_s12  ;;  %p40_p4 = scmp.eq.s32.totalorder %s513_s16, 0 }
   0xa   : > { %s529_s21 = scalar_select %p24_p1, %s464_s14, %s26_s19  }
   0xb   : > { %p531_p5 = por %p34_p2, %p33_p0  ;;  %p535_p6 = por %p40_p4, %p39_p3 }
   0xc   : > { %p105_p7 = scmp.eq.s32.totalorder %s513_s16, 1  ;;  %p111_p8 = scmp.eq.s32.totalorder %s312_s17, 1 }
   0xd   : > { %s653_s23 = scalar_select %p535_p6, 1, 0 }
   0xe   : > { %p338_p10 = scmp.lt.s32.totalorder %s468_s15, 2  ;;  %p542_p11 = por %p105_p7, %p33_p0 }
   0xf   : > { %p546_p12 = por %p111_p8, %p39_p3  ;;  %s137_s26 = sand.u32 1, %s464_s14  }
  0x10   : > { %s654_s24 = scalar_select %p542_p11, 1, 0 }
  0x11   : > { %s655_s25 = scalar_select %p546_p12, 1, 0 }
  0x12   : > { %s316_s27 = sshll.u32 %s468_s15, 7  ;;  %s315_s28 = sshll.u32 %s137_s26, 3 }
  0x13   : > { %s555_s4 = scalar_lea.hbm %s646_s0, %s316_s27  ;;  %s141_s5 = scalar_lea.vmem [#allocation2], %s315_s28 }
  0x14   : > { %s148_s6 = sshll.u32 %s141_s5, 4  ;;  %p559_p13 = pnand %p338_p10, %p531_p5  ;;  %s563_s6 = int_to_ptr.vmem [resolvable:$true] %s148_s6 }
  0x15   : > { %s138_s8 = scalar_lea.sflag [#allocation3], %s137_s26  ;;  %s376_s9 = scalar_lea.hbm %s555_s4, 128 }
  0x16   : > { %p377_p2 = scmp.ne.s32.totalorder %s555_s4, %s376_s9  ;;  %p378_p3 = pneg %p559_p13 }
  0x17   : > { %s381_s17 = scalar_lea.hbm %s646_s0, 256  ;;  %p382_p5 = scmp.lt.s32.totalorder %s555_s4, %s646_s0 }
  0x18   : > { %p379_p4 = pnand %p378_p3, %p377_p2  ;;  %p383_p8 = scmp.lt.s32.totalorder %s381_s17, %s376_s9 }
  0x1a   : > { %p380_p7 = pneg %p379_p4  ;;  %p384_p10 = por %p383_p8, %p382_p5 }
  0x1c   : > { %p385_p9 = pnand %p384_p10, %p380_p7 }
  0x1e   : > { %388 = shalt.err (!%p385_p9)
}
  0x1f   : > { %s389_s22 = scalar_lea.vmem %s563_s6, 128  ;;  %s470_s26 = smov [#allocation2]  }
  0x20   : > { %p390_p0 = scmp.ne.s32.totalorder %s563_s6, %s389_s22  ;;  %s394_s27 = sshll.u32 %s470_s26, 4  ;;  %s395_s27 = int_to_ptr.vmem [resolvable:$false] %s394_s27 }
  0x21   : > { %s396_s28 = scalar_lea.vmem %s395_s27, 256  ;;  %p397_p4 = scmp.lt.s32.totalorder %s563_s6, %s395_s27 }
  0x22   : > { %p392_p1 = pnand %p390_p0, %p378_p3  ;;  %p398_p12 = scmp.lt.s32.totalorder %s396_s28, %s389_s22 }
  0x24   : > { %p393_p2 = pneg %p392_p1  ;;  %p399_p11 = por %p398_p12, %p397_p4 }
  0x26   : > { %p400_p6 = pnand %p399_p11, %p393_p2 }
  0x28   : > { %403 = shalt.err (!%p400_p6)
}
  0x29   : > { %333 = dma.hbm_to_vmem [thread:$0]  (!%p559_p13), %s555_s4, 128, %s563_s6, %s138_s8  }
  0x2a   : > { %p657_p9 = scmp.lt.s32.totalorder %s468_s15, 3  ;;  %p658_p7 = scmp.ge.s32.totalorder %s468_s15, 1 }
  0x2c   : > { %p154_p0 = pnand %p658_p7, %p657_p9 }
  0x2d   : > { %s590_s29 = sand.u32 (!%p154_p0), 1, %s460_s13   ;;  %p659_p6 = scmp.ne.s32.totalorder (!%p154_p0), %s653_s23, 0 }
  0x2e   : > { %157 = sbr.rel (%p154_p0) target bundleno = 392 (0x188), region = 32  ;;  %s318_s30 = sshll.u32 (!%p154_p0), %s590_s29, 3 }
  0x2f   : > { %s160_s5 = scalar_lea.sflag (!%p154_p0), [#allocation3], %s590_s29  ;;  %s163_s7 = scalar_lea.vmem (!%p154_p0), [#allocation2], %s318_s30 }
  0x33   : > { %447 = dma.done.wait (%p659_p6), %s160_s5, 128  }
  0x34   : > { %449 = vsyncadd (%p659_p6), %s160_s5, 4294967168  ;;  %vm189_vm0 = vcmask 261120   ;;  %v186_v0 = vld [vmem:[%s163_s7] sm:$0xff]  ;;  %s323_s9 = sshll.u32 %s513_s16, 7  ;;  %s185_s10 = scalar_lea.vmem [#allocation5], %s318_s30 }
  0x35   : > { %v190_v1 = vsel %vm189_vm0, %v186_v0, 0.0  ;;  %v320_v16 = vld [vmem:[%s647_s1] ss:$0 sm:$0xff]  ;;  %s242_s11 = sshll.u32 %s185_s10, 4  ;;  %s240_s20 = scalar_lea.hbm %s649_s3, %s323_s9  ;;  %s243_s11 = int_to_ptr.vmem [resolvable:$true] %s242_s11 }
  0x36   : > { %191 = vadd.xlane.f32.xlu0 %v190_v1  ;;  %v321_v18 = vld [vmem:[%s648_s2] ss:$0 sm:$0xff]  ;;  %s229_s22 = scalar_lea.sflag [#allocation4], %s590_s29  ;;  %s404_s26 = scalar_lea.vmem %s243_s11, 128 }
  0x37   : > { %p405_p11 = scmp.ne.s32.totalorder %s243_s11, %s404_s26  ;;  %p660_p12 = scmp.ne.s32.totalorder %s654_s24, 0 }
  0x38   : > { %s471_s27 = smov [#allocation5]  }
  0x39   : > { %p406_p13 = pnand %p405_p11, %p660_p12  ;;  %s408_s16 = sshll.u32 %s471_s27, 4  ;;  %s409_s16 = int_to_ptr.vmem [resolvable:$false] %s408_s16 }
  0x3a   : > { %s410_s28 = scalar_lea.vmem %s409_s16, 256  ;;  %p411_p3 = scmp.lt.s32.totalorder %s243_s11, %s409_s16 }
  0x3b   : > { %p407_p1 = pneg %p406_p13  ;;  %p412_p5 = scmp.lt.s32.totalorder %s410_s28, %s404_s26 }
  0x3d   : > { %p413_p8 = por %p412_p5, %p411_p3 }
  0x3f   : > { %p414_p10 = pnand %p413_p8, %p407_p1 }
  0xbf   : > { %v192_v2 = vpop.xlane.xlu0 %191 }
  0xc0   : > { %v194_v3 = vmul.f32 0.03125, %v192_v2 }
  0xc2   : > { %v195_v4 = vsub.f32 %v186_v0, %v194_v3 }
  0xc4   : > { %v196_v5 = vmul.f32 %v195_v4, %v195_v4 }
  0xc6   : > { %v197_v6 = vsel %vm189_vm0, %v196_v5, 0.0 }
  0xc7   : > { %198 = vadd.xlane.f32.xlu0 %v197_v6 }
 0x150   : > { %v199_v7 = vpop.xlane.xlu0 %198 }
 0x151   : > { %v201_v8 = vmul.f32 0.032258064, %v199_v7 }
 0x153   : > { %372 = vrsqrt.f32 %v201_v8  ;;  %vm204_vm1 = vcmp.eq.f32.partialorder %v201_v8, inf  ;;  %v207_v11 = vand.u32 2147483648, %v201_v8  ;;  %vm206_vm2 = vcmp.eq.f32.partialorder %v201_v8, 0.0 }
 0x160   : > { %v373_v9 = vpop.eup %372 }
 0x161   : > { %v203_v10 = vmul.f32 %v373_v9, %v201_v8 }
 0x163   : > { %v205_v12 = vsel %vm204_vm1, %v201_v8, %v203_v10 }
 0x164   : > { %v208_v13 = vsel %vm206_vm2, %v207_v11, %v205_v12 }
 0x165   : > { %v209_v14 = vadd.f32 1e-06, %v208_v13 }
 0x167   : > { %374 = vrcp.f32 %v209_v14 }
 0x174   : > { %v375_v15 = vpop.eup %374 }
 0x175   : > { %v212_v17 = vmul.f32 %v375_v15, %v195_v4 }
 0x177   : > { %v219_v19 = vmul.f32 %v320_v16, %v212_v17 }
 0x179   : > { %v226_v20 = vadd.f32 %v321_v18, %v219_v19 }
 0x17b   : > { %227 = vst.msk [vmem:[%s185_s10] sm:$0xff] %vm189_vm0, %v226_v20 }
 0x17c   : > { %417 = shalt.err (!%p414_p10)
}
 0x17d   : > { %s418_s30 = scalar_lea.hbm %s240_s20, 128  ;;  %s422_s7 = scalar_lea.hbm %s649_s3, 256 }
 0x17e   : > { %p419_p2 = scmp.ne.s32.totalorder %s240_s20, %s418_s30  ;;  %p423_p7 = scmp.lt.s32.totalorder %s240_s20, %s649_s3 }
 0x17f   : > { %p424_p0 = scmp.lt.s32.totalorder %s422_s7, %s418_s30 }
 0x180   : > { %p420_p4 = pnand %p419_p2, %p660_p12 }
 0x181   : > { %p425_p6 = por %p424_p0, %p423_p7 }
 0x182   : > { %p421_p9 = pneg %p420_p4 }
 0x184   : > { %p426_p11 = pnand %p425_p6, %p421_p9 }
 0x186   : > { %429 = shalt.err (!%p426_p11)
}
 0x187   : > { %328 = dma.vmem_to_hbm [thread:$0]  (%p660_p12), %s243_s11, 128, %s240_s20, %s229_s22  }
 0x188 PF: > { %s254_s6 = sand.u32 1, %s456_s12   ;;  %p661_p13 = scmp.ne.s32.totalorder %s655_s25, 0 }
 0x189   : > { %p662_p1 = scmp.ge.s32.totalorder %s468_s15, 2  ;;  %s255_s8 = scalar_lea.sflag [#allocation4], %s254_s6 }
 0x18b   : > { %p335_p3 = pnand %p662_p1, %p661_p13 }
 0x18d   : > { %p336_p5 = pneg %p335_p3 }
 0x18f   : > { %451 = dma.done.wait (%p336_p5), %s255_s8, 128  }
 0x190   : > { %453 = vsyncadd (%p336_p5), %s255_s8, 4294967168  ;;  %p16_p8 = scmp.ge.s32.totalorder %s517_s18, 4   ;;  %s663_s12 = smov %s460_s13 }
 0x191   : > { %s664_s13 = smov %s464_s14  ;;  %s665_s14 = smov %s529_s21 }
 0x192   : > { %s666_s15 = smov %s517_s18  ;;  %18 = sbr.rel (!%p16_p8) target bundleno = 5 (0x5), region = 77 }
 0x197   :  { %260 = vsyncpa [#allocation3], 1 }
 0x198   :  { %262 = vsyncpa [#allocation3 + $0x1], 1 }
 0x199   :  { %263 = vsyncpa [#allocation4], 1 }
 0x19a   :  { %265 = vsyncpa [#allocation4 + $0x1], 1 }

</bundles_post_ra>
